<compile_context>
chip_gen: v5e
topology: v5e:2x2
jax: 0.10.0
libtpu: 0.0.40
codegen_flags: <defaults>
</compile_context>

<pallas_src>
import functools
import math

import jax
import jax.numpy as jnp
from jax import lax
from jax.experimental import pallas as pl
from jax.experimental.pallas import tpu as pltpu


def _round_up(x, m):
    return (x + m - 1) // m * m


def _cdiv(a, b):
    return (a + b - 1) // b


# ----------------------------------------------------------------------------
# In-kernel acos (Abramowitz & Stegun 4.4.46, |error| <= 2e-8 rad on [-1, 1]).
# TODO(synk): lax.acos has no guaranteed Mosaic lowering, so a minimax
# polynomial (VPU/EUP ops only) is used inside the kernel instead.
# ----------------------------------------------------------------------------
def _acos_poly(x):
    ax = jnp.abs(x)
    p = jnp.float32(-0.0012624911)
    p = p * ax + jnp.float32(0.0066700901)
    p = p * ax + jnp.float32(-0.0170881256)
    p = p * ax + jnp.float32(0.0308918810)
    p = p * ax + jnp.float32(-0.0501743046)
    p = p * ax + jnp.float32(0.0889789874)
    p = p * ax + jnp.float32(-0.2145988016)
    p = p * ax + jnp.float32(1.5707963050)
    r = jnp.sqrt(jnp.maximum(jnp.float32(1.0) - ax, jnp.float32(0.0))) * p
    return jnp.where(x < 0, jnp.float32(math.pi) - r, r)


# ----------------------------------------------------------------------------
# Kernel 1: per-(image, spatial-tile) SAM partial sum + squared-error partial.
# Blocks are (1, C, T): C is the reduced spectral axis (sublanes), T is a
# lane-dense spatial tile (multiple of 128).
# ----------------------------------------------------------------------------
def _sam_mse_kernel(xh_ref, tg_ref, sam_ref, sq_ref, *, hw, tile):
    xh = xh_ref[...].astype(jnp.float32)   # (1, C, T)  -- im_true (x_hat[i])
    tg = tg_ref[...].astype(jnp.float32)   # (1, C, T)  -- im_fake (target[i])
    esp = jnp.float32(1e-12)

    nom = jnp.sum(xh * tg, axis=1)                       # (1, T)
    ss_t = jnp.sum(xh * xh, axis=1)                      # (1, T)
    ss_f = jnp.sum(tg * tg, axis=1)                      # (1, T)
    # cos = nom / (max(||t||, esp) * max(||f||, esp))  via rsqrt on the EUP.
    inv_t = lax.rsqrt(jnp.maximum(ss_t, esp * esp))
    inv_f = lax.rsqrt(jnp.maximum(ss_f, esp * esp))
    cos = nom * inv_t * inv_f

    # Preserve PyTorch semantics: acos(|cos|>1) -> NaN -> 0.
    valid = jnp.abs(cos) <= jnp.float32(1.0)
    if hw % tile != 0:
        # Mask spatial padding (only present when H*W is not a tile multiple).
        t = pl.program_id(1)
        col = t * tile + lax.broadcasted_iota(jnp.int32, cos.shape, 1)
        valid = jnp.logical_and(valid, col < hw)
    sam = jnp.where(valid, _acos_poly(jnp.clip(cos, -1.0, 1.0)), jnp.float32(0.0))
    sam_ref[...] = jnp.sum(sam).reshape(1, 1, 1)

    diff = xh - tg
    sq_ref[...] = jnp.sum(diff * diff).reshape(1, 1, 1)


def _pick_spatial_tile(c, hw):
    """Largest multiple-of-128 spatial tile (<=2048) whose double-buffered
    2-input footprint stays under ~8 MiB, capped at the padded spatial size."""
    budget = 8 * 1024 * 1024
    t_budget = budget // (2 * 2 * 4 * max(c, 1))        # 2 inputs x 2 buffers x f32
    t_budget = max(128, (t_budget // 128) * 128)
    return min(2048, t_budget, _round_up(hw, 128))


def _sam_mse_call(x_hat, target):
    N, C, H, W = target.shape
    HW = H * W
    T = _pick_spatial_tile(C, HW)
    HW_pad = _round_up(HW, T)
    num_tiles = HW_pad // T

    xh = jnp.reshape(x_hat, (N, C, HW))
    tg = jnp.reshape(target, (N, C, HW))
    if HW_pad != HW:
        pad = ((0, 0), (0, 0), (0, HW_pad - HW))
        xh = jnp.pad(xh, pad)
        tg = jnp.pad(tg, pad)

    kernel = functools.partial(_sam_mse_kernel, hw=HW, tile=T)
    itemsize = jnp.dtype(target.dtype).itemsize
    cost = pl.CostEstimate(
        flops=int(N * HW_pad * (8 * C + 40)),
        transcendentals=int(3 * N * HW_pad),
        bytes_accessed=int(2 * N * C * HW_pad * itemsize + 2 * N * num_tiles * 4),
    )

    sam_p, sq_p = pl.pallas_call(
        kernel,
        out_shape=(
            jax.ShapeDtypeStruct((N * num_tiles, 1, 1), jnp.float32),  # SAM partials
            jax.ShapeDtypeStruct((N * num_tiles, 1, 1), jnp.float32),  # sq-err partials
        ),
        grid_spec=pltpu.PrefetchScalarGridSpec(
            num_scalar_prefetch=0,
            grid=(N, num_tiles),
            in_specs=[
                pl.BlockSpec((1, C, T), lambda n, t: (n, 0, t)),
                pl.BlockSpec((1, C, T), lambda n, t: (n, 0, t)),
            ],
            out_specs=[
                pl.BlockSpec((1, 1, 1), lambda n, t, nt=num_tiles: (n * nt + t, 0, 0)),
                pl.BlockSpec((1, 1, 1), lambda n, t, nt=num_tiles: (n * nt + t, 0, 0)),
            ],
        ),
        compiler_params=pltpu.CompilerParams(
            dimension_semantics=("parallel", "parallel"),
            vmem_limit_bytes=32 * 1024 * 1024,
        ),
        cost_estimate=cost,
    )(xh, tg)

    return sam_p.reshape(N, num_tiles), sq_p.reshape(N, num_tiles)


# ----------------------------------------------------------------------------
# Kernel 2: sum(log(likelihoods)) over a whole tensor (bpp term), tiled.
# ----------------------------------------------------------------------------
def _log_sum_kernel(x_ref, o_ref):
    x = x_ref[...].astype(jnp.float32)       # cast in-kernel (no wrapper copy)
    o_ref[...] = jnp.sum(jnp.log(x)).reshape(1, 1, 1)


def _log_sum(x, *, lane=1024, max_block_rows=256):
    flat = jnp.reshape(x, (-1,))
    total = flat.shape[0]
    rows_needed = max(1, _cdiv(total, lane))
    block_rows = min(max_block_rows, _round_up(rows_needed, 8))
    rows = _round_up(rows_needed, block_rows)
    padded = rows * lane
    if padded != total:
        flat = jnp.pad(flat, (0, padded - total), constant_values=1)  # log(1) = 0
    x2 = jnp.reshape(flat, (rows, lane))
    num_blocks = rows // block_rows

    itemsize = jnp.dtype(x2.dtype).itemsize
    cost = pl.CostEstimate(
        flops=int(padded),
        transcendentals=int(padded),
        bytes_accessed=int(padded * itemsize + num_blocks * 4),
    )

    partials = pl.pallas_call(
        _log_sum_kernel,
        out_shape=jax.ShapeDtypeStruct((num_blocks, 1, 1), jnp.float32),
        grid_spec=pltpu.PrefetchScalarGridSpec(
            num_scalar_prefetch=0,
            grid=(num_blocks,),
            in_specs=[pl.BlockSpec((block_rows, lane), lambda i: (i, 0))],
            out_specs=pl.BlockSpec((1, 1, 1), lambda i: (i, 0, 0)),
        ),
        compiler_params=pltpu.CompilerParams(
            dimension_semantics=("parallel",),
            vmem_limit_bytes=32 * 1024 * 1024,
        ),
        cost_estimate=cost,
    )(x2)
    return jnp.sum(partials)


# ----------------------------------------------------------------------------
# Forward pass of RateDistortion_SAM_Loss.
# ----------------------------------------------------------------------------
def rate_distortion_sam_loss(output, target, lmbda=0.01, beta=0.01):
    N, C, H, W = target.shape
    num_pixels = N * H * W

    sam_partials, sq_partials = _sam_mse_call(output["x_hat"], target)

    sam_per_image = jnp.sum(sam_partials, axis=1) / (H * W) / jnp.pi * 180.0
    sam_loss = jnp.sum(sam_per_image) / N

    mse_loss = jnp.sum(sq_partials) / (N * C * H * W)       # nn.MSELoss (mean)

    bpp_loss = jnp.float32(0.0)
    for lk in output["likelihoods"].values():
        bpp_loss = bpp_loss + _log_sum(lk) / (-math.log(2) * num_pixels)

    loss = lmbda * (255 ** 2) * mse_loss + bpp_loss + beta * sam_loss
    return {"sam_loss": sam_loss, "bpp_loss": bpp_loss, "mse_loss": mse_loss, "loss": loss}


# ----------------------------------------------------------------------------
# Pure-JAX reference (mirrors the PyTorch math exactly) for a correctness check.
# ----------------------------------------------------------------------------
def _reference(output, target, lmbda=0.01, beta=0.01):
    N, C, H, W = target.shape
    num_pixels = N * H * W
    xh, tg = output["x_hat"], target
    nom = jnp.sum(xh * tg, axis=1)
    den = (jnp.maximum(jnp.sqrt(jnp.sum(xh * xh, axis=1)), 1e-12)
           * jnp.maximum(jnp.sqrt(jnp.sum(tg * tg, axis=1)), 1e-12))
    sam = jnp.arccos(nom / den)
    sam = jnp.where(jnp.isnan(sam), 0.0, sam)
    sam_loss = jnp.sum(jnp.sum(sam, axis=(1, 2)) / (H * W) / jnp.pi * 180.0) / N
    mse = jnp.mean((xh - tg) ** 2)
    bpp = sum(jnp.sum(jnp.log(lk)) / (-math.log(2) * num_pixels)
              for lk in output["likelihoods"].values())
    loss = lmbda * 255 ** 2 * mse + bpp + beta * sam_loss
    return {"sam_loss": sam_loss, "bpp_loss": bpp, "mse_loss": mse, "loss": loss}


if __name__ == "__main__":
    key = jax.random.PRNGKey(0)
    k1, k2, k3, k4 = jax.random.split(key, 4)

    # The module has no learnable parameters; lmbda / beta are the __init__ defaults.
    N, C, H, W = 2, 4, 16, 16
    target = jax.random.uniform(k1, (N, C, H, W), jnp.float32)
    x_hat = jax.random.uniform(k2, (N, C, H, W), jnp.float32)
    lik_y = jax.random.uniform(k3, (N, 8, H // 4, W // 4), jnp.float32,
                               minval=1e-3, maxval=1.0)
    lik_z = jax.random.uniform(k4, (N, 4, H // 8, W // 8), jnp.float32,
                               minval=1e-3, maxval=1.0)
    output = {"x_hat": x_hat, "likelihoods": {"y": lik_y, "z": lik_z}}

    out = rate_distortion_sam_loss(output, target, lmbda=0.01, beta=0.01)
    out = jax.tree_util.tree_map(jax.block_until_ready, out)

    ref = _reference(output, target, lmbda=0.01, beta=0.01)
    for name in ("sam_loss", "bpp_loss", "mse_loss", "loss"):
        assert jnp.allclose(out[name], ref[name], rtol=1e-3, atol=2e-4), (
            name, float(out[name]), float(ref[name]))

    print("KERNEL_OK")
</pallas_src>

<mosaic_0001>
module attributes {stable_mosaic.version = 11 : i64} {
  func.func @_sam_mse_kernel(%arg0: i32, %arg1: i32, %arg2: memref<1x4x256xf32, #tpu.memory_space<vmem>>, %arg3: memref<1x4x256xf32, #tpu.memory_space<vmem>>, %arg4: memref<1x1x1xf32, #tpu.memory_space<vmem>>, %arg5: memref<1x1x1xf32, #tpu.memory_space<vmem>>) attributes {dimension_semantics = [#tpu.dimension_semantics<parallel>, #tpu.dimension_semantics<parallel>], iteration_bounds = array<i64: 2, 1>, scalar_prefetch = 0 : i64, scratch_operands = 0 : i64, tpu.core_type = #tpu.core_type<tc>, window_params = [{transform_indices = @transform_0, window_bounds = array<i64: 1, 4, 256>}, {transform_indices = @transform_1, window_bounds = array<i64: 1, 4, 256>}, {transform_indices = @transform_2, window_bounds = array<i64: 1, 1, 1>}, {transform_indices = @transform_3, window_bounds = array<i64: 1, 1, 1>}]} {
    %c0 = arith.constant 0 : index
    %c0_0 = arith.constant 0 : index
    %c0_1 = arith.constant 0 : index
    %0 = vector.load %arg2[%c0, %c0_0, %c0_1] : memref<1x4x256xf32, #tpu.memory_space<vmem>>, vector<1x4x256xf32>
    %c0_2 = arith.constant 0 : index
    %c0_3 = arith.constant 0 : index
    %c0_4 = arith.constant 0 : index
    %1 = vector.load %arg3[%c0_2, %c0_3, %c0_4] : memref<1x4x256xf32, #tpu.memory_space<vmem>>, vector<1x4x256xf32>
    %2 = arith.mulf %0, %1 : vector<1x4x256xf32>
    %cst = arith.constant dense<0.000000e+00> : vector<1x256xf32>
    %3 = vector.multi_reduction <add>, %2, %cst [1] : vector<1x4x256xf32> to vector<1x256xf32>
    %4 = arith.mulf %0, %0 : vector<1x4x256xf32>
    %cst_5 = arith.constant dense<0.000000e+00> : vector<1x256xf32>
    %5 = vector.multi_reduction <add>, %4, %cst_5 [1] : vector<1x4x256xf32> to vector<1x256xf32>
    %6 = arith.mulf %1, %1 : vector<1x4x256xf32>
    %cst_6 = arith.constant dense<0.000000e+00> : vector<1x256xf32>
    %7 = vector.multi_reduction <add>, %6, %cst_6 [1] : vector<1x4x256xf32> to vector<1x256xf32>
    %cst_7 = arith.constant 9.99999996E-13 : f32
    %cst_8 = arith.constant 9.99999996E-13 : f32
    %8 = arith.mulf %cst_7, %cst_8 : f32
    %9 = vector.broadcast %8 : f32 to vector<1x256xf32>
    %10 = arith.maximumf %5, %9 : vector<1x256xf32>
    %11 = math.rsqrt %10 : vector<1x256xf32>
    %cst_9 = arith.constant 9.99999996E-13 : f32
    %cst_10 = arith.constant 9.99999996E-13 : f32
    %12 = arith.mulf %cst_9, %cst_10 : f32
    %13 = vector.broadcast %12 : f32 to vector<1x256xf32>
    %14 = arith.maximumf %7, %13 : vector<1x256xf32>
    %15 = math.rsqrt %14 : vector<1x256xf32>
    %16 = arith.mulf %3, %11 : vector<1x256xf32>
    %17 = arith.mulf %16, %15 : vector<1x256xf32>
    %18 = math.absf %17 : vector<1x256xf32>
    %cst_11 = arith.constant 1.000000e+00 : f32
    %19 = vector.broadcast %cst_11 : f32 to vector<1x256xf32>
    %20 = arith.cmpf ole, %18, %19 : vector<1x256xf32>
    %cst_12 = arith.constant -1.000000e+00 : f32
    %cst_13 = arith.constant 1.000000e+00 : f32
    %21 = vector.broadcast %cst_12 : f32 to vector<1x256xf32>
    %22 = arith.maximumf %21, %17 : vector<1x256xf32>
    %23 = vector.broadcast %cst_13 : f32 to vector<1x256xf32>
    %24 = arith.minimumf %23, %22 : vector<1x256xf32>
    %25 = math.absf %24 : vector<1x256xf32>
    %cst_14 = arith.constant -0.0012624911 : f32
    %26 = vector.broadcast %cst_14 : f32 to vector<1x256xf32>
    %27 = arith.mulf %26, %25 : vector<1x256xf32>
    %cst_15 = arith.constant 6.670090e-03 : f32
    %28 = vector.broadcast %cst_15 : f32 to vector<1x256xf32>
    %29 = arith.addf %27, %28 : vector<1x256xf32>
    %30 = arith.mulf %29, %25 : vector<1x256xf32>
    %cst_16 = arith.constant -0.0170881264 : f32
    %31 = vector.broadcast %cst_16 : f32 to vector<1x256xf32>
    %32 = arith.addf %30, %31 : vector<1x256xf32>
    %33 = arith.mulf %32, %25 : vector<1x256xf32>
    %cst_17 = arith.constant 0.0308918804 : f32
    %34 = vector.broadcast %cst_17 : f32 to vector<1x256xf32>
    %35 = arith.addf %33, %34 : vector<1x256xf32>
    %36 = arith.mulf %35, %25 : vector<1x256xf32>
    %cst_18 = arith.constant -0.0501743034 : f32
    %37 = vector.broadcast %cst_18 : f32 to vector<1x256xf32>
    %38 = arith.addf %36, %37 : vector<1x256xf32>
    %39 = arith.mulf %38, %25 : vector<1x256xf32>
    %cst_19 = arith.constant 0.0889789909 : f32
    %40 = vector.broadcast %cst_19 : f32 to vector<1x256xf32>
    %41 = arith.addf %39, %40 : vector<1x256xf32>
    %42 = arith.mulf %41, %25 : vector<1x256xf32>
    %cst_20 = arith.constant -0.214598805 : f32
    %43 = vector.broadcast %cst_20 : f32 to vector<1x256xf32>
    %44 = arith.addf %42, %43 : vector<1x256xf32>
    %45 = arith.mulf %44, %25 : vector<1x256xf32>
    %cst_21 = arith.constant 1.57079625 : f32
    %46 = vector.broadcast %cst_21 : f32 to vector<1x256xf32>
    %47 = arith.addf %45, %46 : vector<1x256xf32>
    %cst_22 = arith.constant 1.000000e+00 : f32
    %48 = vector.broadcast %cst_22 : f32 to vector<1x256xf32>
    %49 = arith.subf %48, %25 : vector<1x256xf32>
    %cst_23 = arith.constant 0.000000e+00 : f32
    %50 = vector.broadcast %cst_23 : f32 to vector<1x256xf32>
    %51 = arith.maximumf %49, %50 : vector<1x256xf32>
    %52 = math.sqrt %51 : vector<1x256xf32>
    %53 = arith.mulf %52, %47 : vector<1x256xf32>
    %cst_24 = arith.constant 0.000000e+00 : f32
    %54 = vector.broadcast %cst_24 : f32 to vector<1x256xf32>
    %55 = arith.cmpf olt, %24, %54 : vector<1x256xf32>
    %cst_25 = arith.constant 3.14159274 : f32
    %56 = vector.broadcast %cst_25 : f32 to vector<1x256xf32>
    %57 = arith.subf %56, %53 : vector<1x256xf32>
    %58 = arith.select %55, %57, %53 : vector<1x256xi1>, vector<1x256xf32>
    %cst_26 = arith.constant 0.000000e+00 : f32
    %59 = vector.broadcast %cst_26 : f32 to vector<1x256xf32>
    %60 = arith.select %20, %58, %59 : vector<1x256xi1>, vector<1x256xf32>
    %61 = vector.shape_cast %60 : vector<1x256xf32> to vector<1x1x256xf32>
    %cst_27 = arith.constant dense<0.000000e+00> : vector<1xf32>
    %62 = vector.multi_reduction <add>, %61, %cst_27 [1, 2] : vector<1x1x256xf32> to vector<1xf32>
    %63 = vector.shape_cast %62 : vector<1xf32> to vector<1x1x1xf32>
    %64 = vector.extract %63[0, 0, 0] : f32 from vector<1x1x1xf32>
    %65 = vector.broadcast %64 : f32 to vector<1x1x1xf32>
    %c0_28 = arith.constant 0 : index
    %c0_29 = arith.constant 0 : index
    %c0_30 = arith.constant 0 : index
    %66 = vector.load %arg4[%c0_28, %c0_29, %c0_30] : memref<1x1x1xf32, #tpu.memory_space<vmem>>, vector<1x1x1xf32>
    tpu.vector_store %arg4[%c0_28, %c0_29, %c0_30], %65 {strides = array<i32>} : memref<1x1x1xf32, #tpu.memory_space<vmem>>, vector<1x1x1xf32>,
    %67 = arith.subf %0, %1 : vector<1x4x256xf32>
    %68 = arith.mulf %67, %67 : vector<1x4x256xf32>
    %69 = vector.shape_cast %68 : vector<1x4x256xf32> to vector<1x1x4x256xf32>
    %cst_31 = arith.constant dense<0.000000e+00> : vector<1xf32>
    %70 = vector.multi_reduction <add>, %69, %cst_31 [1, 2, 3] : vector<1x1x4x256xf32> to vector<1xf32>
    %71 = vector.shape_cast %70 : vector<1xf32> to vector<1x1x1x1xf32>
    %72 = vector.extract %71[0, 0, 0, 0] : f32 from vector<1x1x1x1xf32>
    %73 = vector.broadcast %72 : f32 to vector<1x1x1xf32>
    %c0_32 = arith.constant 0 : index
    %c0_33 = arith.constant 0 : index
    %c0_34 = arith.constant 0 : index
    %74 = vector.load %arg5[%c0_32, %c0_33, %c0_34] : memref<1x1x1xf32, #tpu.memory_space<vmem>>, vector<1x1x1xf32>
    tpu.vector_store %arg5[%c0_32, %c0_33, %c0_34], %73 {strides = array<i32>} : memref<1x1x1xf32, #tpu.memory_space<vmem>>, vector<1x1x1xf32>,
    return
  }
  func.func @transform_0(%arg0: i32, %arg1: i32) -> (i32, i32, i32) {
    %c0_i32 = arith.constant 0 : i32
    %c0_i32_0 = arith.constant 0 : i32
    return %arg0, %c0_i32, %arg1 : i32, i32, i32
  }
  func.func @transform_1(%arg0: i32, %arg1: i32) -> (i32, i32, i32) {
    %c0_i32 = arith.constant 0 : i32
    %c0_i32_0 = arith.constant 0 : i32
    return %arg0, %c0_i32, %arg1 : i32, i32, i32
  }
  func.func @transform_2(%arg0: i32, %arg1: i32) -> (i32, i32, i32) {
    %c1_i32 = arith.constant 1 : i32
    %0 = arith.muli %arg0, %c1_i32 : i32
    %1 = arith.addi %0, %arg1 : i32
    %c0_i32 = arith.constant 0 : i32
    %c0_i32_0 = arith.constant 0 : i32
    %c0_i32_1 = arith.constant 0 : i32
    return %1, %c0_i32, %c0_i32_0 : i32, i32, i32
  }
  func.func @transform_3(%arg0: i32, %arg1: i32) -> (i32, i32, i32) {
    %c1_i32 = arith.constant 1 : i32
    %0 = arith.muli %arg0, %c1_i32 : i32
    %1 = arith.addi %0, %arg1 : i32
    %c0_i32 = arith.constant 0 : i32
    %c0_i32_0 = arith.constant 0 : i32
    %c0_i32_1 = arith.constant 0 : i32
    return %1, %c0_i32, %c0_i32_0 : i32, i32, i32
  }
}

</mosaic_0001>

<bundles_post_ra>
// kernel: tpu_custom_call.1
= control target key start
LH: loop header
LB: loop body
LE: loop exit
PB: predicated region body
PF: predicated region fallthrough
CT: control target
= control target key end

     0   :  { %9 = vsyncpa [#allocation3], 0  ;;  %s1000_s0 = inlined_call_operand.hbm [shape: f32[2,4,256], index: 0, kind: input, shape index: {}]   ;;  %s1001_s1 = inlined_call_operand.hbm [shape: f32[2,4,256], index: 1, kind: input, shape index: {}]   ;;  %s1002_s2 = inlined_call_operand.vmem [shape: f32[2,1,1], index: 2, kind: output, shape index: {0}]   ;;  %s1003_s3 = inlined_call_operand.vmem [shape: f32[2,1,1], index: 3, kind: output, shape index: {1}]  }
   0x1   :  { %11 = vsyncpa [#allocation3 + $0x1], 0 }
   0x2   :  { %12 = vsyncpa [#allocation5], 0 }
   0x3   :  { %14 = vsyncpa [#allocation5 + $0x1], 0  ;;  %s854_s12 = smov 0   ;;  %s856_s13 = smov 0  }
   0x4   :  { %s858_s14 = smov 0   ;;  %s860_s15 = smov 0  }
   0x5   :  { %s862_s16 = smov 0   ;;  %s864_s17 = smov 0  }
   0x6 LB: > { %s623_s18 = sadd.s32 4294967295, %s832_s17   ;;  %s32_s19 = sadd.s32 1, %s828_s16  ;;  %s832_s17 = sphi %s864_s17, %s20_s17   ;;  %s828_s16 = sphi %s862_s16, %s1014_s16   ;;  %s824_s15 = sphi %s860_s15, %s1013_s15   ;;  %s820_s14 = sphi %s858_s14, %s1012_s14   ;;  %s816_s13 = sphi %s856_s13, %s1011_s13   ;;  %s812_s12 = sphi %s854_s12, %s1010_s12  }
   0x7   : > { %p34_p0 = scmp.ge.s32.totalorder %s32_s19, 2  ;;  %s41_s20 = sadd.s32 1, %s820_s14 }
   0x8   : > { %p48_p1 = scmp.ne.s32.totalorder %s820_s14, %s816_s13  ;;  %p49_p2 = scmp.eq.s32.totalorder %s832_s17, 0 }
   0x9   : > { %s1016_s19 = smov (%p34_p0, %s32_s19), 0  ;;  %p54_p4 = scmp.ne.s32.totalorder %s816_s13, %s812_s12 }
   0xa   : > { %p890_p3 = por %p49_p2, %p48_p1  ;;  %s36_s22 = ssub.s32 %s828_s16, %s1016_s19 }
   0xb   : > { %p55_p5 = scmp.eq.s32.totalorder %s623_s18, 0  ;;  %p39_p6 = scmp.eq.s32.totalorder %s36_s22, 0 }
   0xc   : > { %p657_p8 = scmp.lt.s32.totalorder %s832_s17, 2  ;;  %s162_s25 = sand.u32 1, %s820_s14  }
   0xd   : > { %p897_p7 = por %p55_p5, %p54_p4  ;;  %s640_s26 = sshll.u32 %s828_s16, 3 }
   0xe   : > { %s903_s24 = scalar_select %p39_p6, %s820_s14, %s41_s20  }
   0xf   : > { %s627_s27 = sshll.u32 %s162_s25, 3  ;;  %s173_s30 = scalar_lea.hbm %s1000_s0, %s640_s26 }
  0x10   : > { %s175_s4 = sshll.u32 %s173_s30, 4  ;;  %s166_s5 = scalar_lea.vmem [#allocation2], %s627_s27  ;;  %s176_s4 = int_to_ptr.hbm [resolvable:$true] %s175_s4 }
  0x11   : > { %s177_s6 = sshll.u32 %s166_s5, 4  ;;  %p651_p9 = pnand %p657_p8, %p890_p3  ;;  %s178_s6 = int_to_ptr.vmem [resolvable:$true] %s177_s6 }
  0x12   : > { %p633_p10 = scmp.ge.s32.totalorder %s832_s17, 1  ;;  %p204_p11 = scmp.lt.s32.totalorder %s832_s17, 3 }
  0x13   : > { %s163_s7 = scalar_lea.sflag [#allocation3], %s162_s25  ;;  %s195_s10 = scalar_lea.hbm %s1001_s1, %s640_s26 }
  0x14   : > { %653 = dma.hbm_to_vmem [thread:$0]  (!%p651_p9), %s176_s4, 128, %s178_s6, %s163_s7  }
  0x15   : > { %p205_p12 = pnand %p633_p10, %p204_p11  ;;  %s197_s11 = sshll.u32 %s195_s10, 4  ;;  %s198_s11 = int_to_ptr.hbm [resolvable:$true] %s197_s11 }
  0x16   : > { %s188_s12 = scalar_lea.vmem [#allocation4], %s627_s27  ;;  %s185_s20 = scalar_lea.sflag [#allocation5], %s162_s25 }
  0x17   : > { %s199_s18 = sshll.u32 %s188_s12, 4  ;;  %208 = sbr.rel (%p205_p12) target bundleno = 323 (0x143), region = 28  ;;  %s200_s18 = int_to_ptr.vmem [resolvable:$true] %s199_s18 }
  0x18   : > { %656 = dma.hbm_to_vmem [thread:$0]  (!%p651_p9), %s198_s11, 128, %s200_s18, %s185_s20  }
  0x19   : > { %s210_s21 = sand.u32 (!%p205_p12), 1, %s816_s13  }
  0x1a   : > { %s634_s22 = sshll.u32 (!%p205_p12), %s210_s21, 3  ;;  %s211_s28 = scalar_lea.sflag (!%p205_p12), [#allocation3], %s210_s21 }
  0x1b   : > { %s214_s29 = scalar_lea.vmem (!%p205_p12), [#allocation2], %s634_s22 }
  0x1c   : > { %803 = dma.done.wait (%p897_p7), %s211_s28, 128  }
  0x1d   : > { %805 = vsyncadd (%p897_p7), %s211_s28, 4294967168  ;;  %s221_s26 = scalar_lea.sflag [#allocation5], %s210_s21  ;;  %s224_s27 = scalar_lea.vmem [#allocation4], %s634_s22 }
  0x1e   : > { %807 = dma.done.wait (%p897_p7), %s221_s26, 128  }
  0x1f   : > { %809 = vsyncadd (%p897_p7), %s221_s26, 4294967168  ;;  %v926_v0 = vld [vmem:[%s214_s29] sm:$0xff]  ;;  %v928_v1 = vld [vmem:[%s224_s27] sm:$0xff]  ;;  %vm277_vm0 = vcmask 1043456   ;;  %p259_p13 = scmp.lt.s32.totalorder %s824_s15, 1 }
  0x20   : > { %v270_v2 = vmul.f32 %v928_v1, %v926_v0  ;;  %v292_v3 = vmul.f32 %v926_v0, %v926_v0  ;;  %v313_v6 = vmul.f32 %v928_v1, %v928_v1 }
  0x21   : > { %s1018_s15 = smov (!%p259_p13, %s824_s15), 1 }
  0x22   : > { %272 = vst [vmem:[#allocation1] ss:$2 sm:$0xff] %v270_v2  ;;  %s261_s30 = scalar_lea.vmem %s1002_s2, %s1018_s15  ;;  %s266_s7 = scalar_lea.vmem %s1003_s3, %s1018_s15 }
  0x29   : > { %v273_v4 = vld.sshfl [vmem:[#allocation1] sm:$0xff pattern:$0x75316420]  ;;  %v274_v5 = vld.sshfl [vmem:[#allocation1 + $0x8] sm:$0xff pattern:$0x75316420] }
  0x2a   : > { %294 = vst [vmem:[#allocation1] ss:$2 sm:$0xff] %v292_v3  ;;  %v278_v21 = vsel %vm277_vm0, %v273_v4, 0.0  ;;  %v285_v22 = vsel %vm277_vm0, %v274_v5, 0.0 }
  0x2b   : > { %v279_v33 = vrot.slane %v278_v21, 4  ;;  %v286_v34 = vrot.slane %v285_v22, 4 }
  0x2d   : > { %v280_v41 = vadd.f32 %v279_v33, %v278_v21  ;;  %v287_v42 = vadd.f32 %v286_v34, %v285_v22  ;;  %v474_v33 = vsub.f32 %v926_v0, %v928_v1 }
  0x2f   : > { %v281_v47 = vrot.slane %v280_v41, 2  ;;  %v288_v49 = vrot.slane %v287_v42, 2 }
  0x31   : > { %v295_v7 = vld.sshfl [vmem:[#allocation1] sm:$0xff pattern:$0x75316420]  ;;  %v296_v8 = vld.sshfl [vmem:[#allocation1 + $0x8] sm:$0xff pattern:$0x75316420]  ;;  %v282_v55 = vadd.f32 %v281_v47, %v280_v41  ;;  %v289_v57 = vadd.f32 %v288_v49, %v287_v42 }
  0x32   : > { %v299_v9 = vsel %vm277_vm0, %v295_v7, 0.0  ;;  %v306_v10 = vsel %vm277_vm0, %v296_v8, 0.0  ;;  %315 = vst [vmem:[#allocation1] ss:$2 sm:$0xff] %v313_v6 }
  0x33   : > { %v300_v11 = vrot.slane %v299_v9, 4  ;;  %v307_v12 = vrot.slane %v306_v10, 4  ;;  %v283_v61 = vrot.slane %v282_v55, 1  ;;  %v290_v2 = vrot.slane %v289_v57, 1 }
  0x35   : > { %v301_v13 = vadd.f32 %v300_v11, %v299_v9  ;;  %v308_v14 = vadd.f32 %v307_v12, %v306_v10  ;;  %v284_v12 = vadd.f32 %v283_v61, %v282_v55 }
  0x37   : > { %v302_v15 = vrot.slane %v301_v13, 2  ;;  %v309_v16 = vrot.slane %v308_v14, 2 }
  0x39   : > { %v303_v17 = vadd.f32 %v302_v15, %v301_v13  ;;  %v310_v18 = vadd.f32 %v309_v16, %v308_v14  ;;  %v316_v19 = vld.sshfl [vmem:[#allocation1] sm:$0xff pattern:$0x75316420]  ;;  %v317_v20 = vld.sshfl [vmem:[#allocation1 + $0x8] sm:$0xff pattern:$0x75316420]  ;;  %v291_v13 = vadd.f32 %v290_v2, %v289_v57 }
  0x3a   : > { %v320_v23 = vsel %vm277_vm0, %v316_v19, 0.0  ;;  %v327_v24 = vsel %vm277_vm0, %v317_v20, 0.0 }
  0x3b   : > { %v304_v25 = vrot.slane %v303_v17, 1  ;;  %v311_v26 = vrot.slane %v310_v18, 1  ;;  %v321_v27 = vrot.slane %v320_v23, 4  ;;  %v328_v28 = vrot.slane %v327_v24, 4 }
  0x3d   : > { %v305_v29 = vadd.f32 %v304_v25, %v303_v17  ;;  %v312_v30 = vadd.f32 %v311_v26, %v310_v18  ;;  %v322_v31 = vadd.f32 %v321_v27, %v320_v23  ;;  %v329_v32 = vadd.f32 %v328_v28, %v327_v24 }
  0x3f   : > { %v323_v35 = vrot.slane %v322_v31, 2  ;;  %v330_v36 = vrot.slane %v329_v32, 2  ;;  %v334_v37 = vmax.f32 %v305_v29, 1e-24  ;;  %v335_v38 = vmax.f32 %v312_v30, 1e-24 }
  0x41   : > { %v324_v39 = vadd.f32 %v323_v35, %v322_v31  ;;  %v331_v40 = vadd.f32 %v330_v36, %v329_v32  ;;  %706 = vrsqrt.f32 %v334_v37  ;;  %vm342_vm1 = vweird.f32 %v334_v37 }
  0x42   : > { %708 = vrsqrt.f32 %v335_v38  ;;  %vm352_vm3 = vweird.f32 %v335_v38 }
  0x43   : > { %v325_v43 = vrot.slane %v324_v39, 1  ;;  %v332_v44 = vrot.slane %v331_v40, 1 }
  0x45   : > { %v326_v45 = vadd.f32 %v325_v43, %v324_v39  ;;  %v333_v46 = vadd.f32 %v332_v44, %v331_v40 }
  0x47   : > { %v707_v48 = vpop.eup %706  ;;  %v356_v50 = vmax.f32 %v326_v45, 1e-24  ;;  %v357_v51 = vmax.f32 %v333_v46, 1e-24 }
  0x48   : > { %v709_v52 = vpop.eup %708  ;;  %v337_v53 = vmul.f32 %v707_v48, %v334_v37  ;;  %vm343_vm2 = vweird.f32 %v707_v48 }
  0x49   : > { %v347_v54 = vmul.f32 %v709_v52, %v335_v38  ;;  %710 = vrsqrt.f32 %v356_v50  ;;  %vm353_vm4 = vweird.f32 %v709_v52  ;;  %vm942_vm5 = vmor %vm342_vm1, %vm343_vm2  ;;  %vm364_vm7 = vweird.f32 %v356_v50 }
  0x4a   : > { %v338_v56 = vmul.f32 %v707_v48, %v337_v53  ;;  %712 = vrsqrt.f32 %v357_v51  ;;  %vm946_vm6 = vmor %vm352_vm3, %vm353_vm4  ;;  %vm374_vm9 = vweird.f32 %v357_v51  ;;  %v475_v38 = vmul.f32 %v474_v33, %v474_v33 }
  0x4b   : > { %v348_v58 = vmul.f32 %v709_v52, %v347_v54 }
  0x4c   : > { %v339_v59 = vmul.f32 0.5, %v338_v56  ;;  %477 = vst [vmem:[#allocation1] ss:$2 sm:$0xff] %v475_v38 }
  0x4d   : > { %v349_v60 = vmul.f32 0.5, %v348_v58 }
  0x4e   : > { %v340_v62 = vsub.f32 1.5, %v339_v59 }
  0x4f   : > { %v711_v63 = vpop.eup %710  ;;  %v350_v3 = vsub.f32 1.5, %v349_v60 }
  0x50   : > { %v713_v4 = vpop.eup %712  ;;  %v341_v5 = vmul.f32 %v707_v48, %v340_v62  ;;  %v359_v6 = vmul.f32 %v711_v63, %v356_v50  ;;  %vm365_vm8 = vweird.f32 %v711_v63 }
  0x51   : > { %v351_v8 = vmul.f32 %v709_v52, %v350_v3  ;;  %v369_v9 = vmul.f32 %v713_v4, %v357_v51  ;;  %vm375_vm10 = vweird.f32 %v713_v4  ;;  %vm366_vm11 = vmor %vm364_vm7, %vm365_vm8 }
  0x52   : > { %v360_v11 = vmul.f32 %v711_v63, %v359_v6  ;;  %v345_v15 = vsel %vm942_vm5, %v707_v48, %v341_v5  ;;  %vm376_vm12 = vmor %vm374_vm9, %vm375_vm10 }
  0x53   : > { %v370_v14 = vmul.f32 %v713_v4, %v369_v9  ;;  %v355_v17 = vsel %vm946_vm6, %v709_v52, %v351_v8  ;;  %v378_v21 = vmul.f32 %v345_v15, %v284_v12  ;;  %vm458_vm6 = vcmask 1040384  }
  0x54   : > { %v361_v16 = vmul.f32 0.5, %v360_v11  ;;  %v379_v23 = vmul.f32 %v355_v17, %v291_v13 }
  0x55   : > { %v371_v18 = vmul.f32 0.5, %v370_v14 }
  0x56   : > { %v362_v19 = vsub.f32 1.5, %v361_v16 }
  0x57   : > { %v372_v20 = vsub.f32 1.5, %v371_v18 }
  0x58   : > { %v363_v22 = vmul.f32 %v711_v63, %v362_v19 }
  0x59   : > { %v373_v24 = vmul.f32 %v713_v4, %v372_v20 }
  0x5a   : > { %v367_v25 = vsel %vm366_vm11, %v711_v63, %v363_v22 }
  0x5b   : > { %v377_v26 = vsel %vm376_vm12, %v713_v4, %v373_v24  ;;  %v954_v27 = vmul.f32 %v378_v21, %v367_v25 }
  0x5c   : > { %v956_v28 = vmul.f32 %v379_v23, %v377_v26 }
  0x5d   : > { %v636_v29 = vclamps-f32 %v954_v27, 1.0  ;;  %v382_v20 = vand.u32 2147483647, %v954_v27 }
  0x5e   : > { %v637_v30 = vclamps-f32 %v956_v28, 1.0  ;;  %v383_v23 = vand.u32 2147483647, %v956_v28 }
  0x5f   : > { %v390_v31 = vand.u32 2147483647, %v636_v29  ;;  %vm450_vm2 = vcmp.lt.f32.partialorder %v636_v29, 0.0  ;;  %vm384_vm3 = vcmp.le.f32.partialorder %v382_v20, 1.0 }
  0x60   : > { %v391_v32 = vand.u32 2147483647, %v637_v30  ;;  %vm451_vm4 = vcmp.lt.f32.partialorder %v637_v30, 0.0  ;;  %vm385_vm5 = vcmp.le.f32.partialorder %v383_v23, 1.0 }
  0x61   : > { %v392_v34 = vmul.f32 -0.0012624911, %v390_v31  ;;  %v420_v35 = vsub.f32 1.0, %v390_v31 }
  0x62   : > { %v393_v36 = vmul.f32 -0.0012624911, %v391_v32  ;;  %v421_v37 = vsub.f32 1.0, %v391_v32 }
  0x63   : > { %v394_v39 = vadd.f32 0.00667009, %v392_v34  ;;  %v422_v40 = vmax.f32 %v420_v35, 0.0 }
  0x64   : > { %v395_v41 = vadd.f32 0.00667009, %v393_v36  ;;  %v423_v42 = vmax.f32 %v421_v37, 0.0 }
  0x65   : > { %v396_v43 = vmul.f32 %v394_v39, %v390_v31  ;;  %714 = vrsqrt.f32 %v422_v40  ;;  %vm431_vm13 = vcmp.eq.f32.partialorder %v422_v40, inf  ;;  %v434_v10 = vand.u32 2147483648, %v422_v40 }
  0x66   : > { %v397_v44 = vmul.f32 %v395_v41, %v391_v32  ;;  %716 = vrsqrt.f32 %v423_v42  ;;  %vm443_vm14 = vcmp.eq.f32.partialorder %v423_v42, inf  ;;  %vm433_vm15 = vcmp.eq.f32.partialorder %v422_v40, 0.0  ;;  %v479_v41 = vld.sshfl [vmem:[#allocation1 + $0x8] sm:$0xff pattern:$0x75316420] }
  0x67   : > { %v398_v45 = vadd.f32 -0.017088126, %v396_v43  ;;  %v446_v13 = vand.u32 2147483648, %v423_v42  ;;  %vm445_vm1 = vcmp.eq.f32.partialorder %v423_v42, 0.0  ;;  %v483_v29 = vsel %vm277_vm0, %v479_v41, 0.0 }
  0x68   : > { %v399_v46 = vadd.f32 -0.017088126, %v397_v44 }
  0x69   : > { %v400_v47 = vmul.f32 %v398_v45, %v390_v31 }
  0x6a   : > { %v401_v48 = vmul.f32 %v399_v46, %v391_v32 }
  0x6b   : > { %v715_v49 = vpop.eup %714  ;;  %v402_v0 = vadd.f32 0.03089188, %v400_v47 }
  0x6c   : > { %v717_v1 = vpop.eup %716  ;;  %v403_v50 = vadd.f32 0.03089188, %v401_v48  ;;  %v425_v51 = vmul.f32 %v715_v49, %v422_v40 }
  0x6d   : > { %v404_v52 = vmul.f32 %v402_v0, %v390_v31  ;;  %v437_v53 = vmul.f32 %v717_v1, %v423_v42 }
  0x6e   : > { %v405_v54 = vmul.f32 %v403_v50, %v391_v32  ;;  %v426_v55 = vmul.f32 %v715_v49, %v425_v51 }
  0x6f   : > { %v406_v56 = vadd.f32 -0.050174303, %v404_v52  ;;  %v438_v57 = vmul.f32 %v717_v1, %v437_v53 }
  0x70   : > { %v407_v58 = vadd.f32 -0.050174303, %v405_v54  ;;  %v427_v59 = vmul.f32 0.5, %v426_v55 }
  0x71   : > { %v408_v60 = vmul.f32 %v406_v56, %v390_v31  ;;  %v439_v61 = vmul.f32 0.5, %v438_v57 }
  0x72   : > { %v409_v62 = vmul.f32 %v407_v58, %v391_v32  ;;  %v428_v63 = vsub.f32 1.5, %v427_v59 }
  0x73   : > { %v410_v2 = vadd.f32 0.08897899, %v408_v60  ;;  %v440_v3 = vsub.f32 1.5, %v439_v61 }
  0x74   : > { %v411_v4 = vadd.f32 0.08897899, %v409_v62  ;;  %v429_v5 = vmul.f32 %v715_v49, %v428_v63 }
  0x75   : > { %v412_v6 = vmul.f32 %v410_v2, %v390_v31  ;;  %v441_v7 = vmul.f32 %v717_v1, %v440_v3 }
  0x76   : > { %v413_v8 = vmul.f32 %v411_v4, %v391_v32  ;;  %v430_v9 = vmul.f32 %v429_v5, %v422_v40 }
  0x77   : > { %v414_v11 = vadd.f32 -0.2145988, %v412_v6  ;;  %v442_v12 = vmul.f32 %v441_v7, %v423_v42 }
  0x78   : > { %v415_v14 = vadd.f32 -0.2145988, %v413_v8  ;;  %v432_v15 = vsel %vm431_vm13, %v422_v40, %v430_v9  ;;  %v478_v40 = vld.sshfl [vmem:[#allocation1] sm:$0xff pattern:$0x75316420] }
  0x79   : > { %v416_v16 = vmul.f32 %v414_v11, %v390_v31  ;;  %v444_v17 = vsel %vm443_vm14, %v423_v42, %v442_v12  ;;  %v435_v19 = vsel %vm433_vm15, %v434_v10, %v432_v15  ;;  %v482_v27 = vsel %vm277_vm0, %v478_v40, 0.0 }
  0x7a   : > { %v417_v18 = vmul.f32 %v415_v14, %v391_v32  ;;  %v447_v22 = vsel %vm445_vm1, %v446_v13, %v444_v17  ;;  %v484_v28 = vadd.f32 %v483_v29, %v482_v27  ;;  %vm472_vm0 = vcmask 0  }
  0x7b   : > { %v418_v21 = vadd.f32 1.5707963, %v416_v16 }
  0x7c   : > { %v419_v24 = vadd.f32 1.5707963, %v417_v18 }
  0x7d   : > { %v448_v25 = vmul.f32 %v435_v19, %v418_v21 }
  0x7e   : > { %v449_v26 = vmul.f32 %v447_v22, %v419_v24 }
  0x7f   : > { %v452_v31 = vsub.f32 3.1415927, %v448_v25 }
  0x80   : > { %v453_v32 = vsub.f32 3.1415927, %v449_v26 }
  0x81   : > { %v454_v33 = vsel %vm450_vm2, %v452_v31, %v448_v25 }
  0x82   : > { %v455_v34 = vsel %vm451_vm4, %v453_v32, %v449_v26  ;;  %v456_v35 = vsel %vm384_vm3, %v454_v33, 0.0 }
  0x83   : > { %v457_v36 = vsel %vm385_vm5, %v455_v34, 0.0  ;;  %v459_v37 = vsel %vm458_vm6, %v456_v35, 0.0 }
  0x84   : > { %v460_v38 = vsel %vm458_vm6, %v457_v36, 0.0 }
  0x85   : > { %v461_v39 = vadd.f32 %v460_v38, %v459_v37 }
  0x87   : > { %462 = vadd.xlane.f32.xlu0 %v461_v39 }
  0x8f   : > { %485 = vadd.xlane.f32.xlu0 %v484_v28 }
  0xfa   : > { %v463_v30 = vpop.xlane.xlu0 %462 }
  0xfb   : > { %v464_v42 = vrot.slane %v463_v30, 4 }
  0xfd   : > { %v465_v43 = vadd.f32 %v464_v42, %v463_v30 }
  0xff   : > { %v466_v44 = vrot.slane %v465_v43, 2 }
 0x101   : > { %v467_v45 = vadd.f32 %v466_v44, %v465_v43 }
 0x102   : > { %v486_v46 = vpop.xlane.xlu0 %485 }
 0x103   : > { %v487_v47 = vrot.slane %v486_v46, 4  ;;  %v468_v48 = vrot.slane %v467_v45, 1 }
 0x105   : > { %v488_v49 = vadd.f32 %v487_v47, %v486_v46  ;;  %v469_v0 = vadd.f32 %v468_v48, %v467_v45 }
 0x107   : > { %v489_v1 = vrot.slane %v488_v49, 2  ;;  %642 = vpush %v469_v0 }
 0x109   : > { %v490_v50 = vadd.f32 %v489_v1, %v488_v49 }
 0x10b   : > { %v491_v51 = vrot.slane %v490_v50, 1 }
 0x10d   : > { %v492_v52 = vadd.f32 %v491_v51, %v490_v50 }
 0x10f   : > { %644 = vpush %v492_v52 }
 0x138   : > { %s643_s4 = spop %642 }
 0x139   : > { %v471_v53 = vstv %s643_s4 }
 0x13a   : > { %473 = vst.msk [vmem:[%s261_s30] sm:$0x1] %vm472_vm0, %v471_v53 }
 0x140   : > { %s645_s8 = spop %644 }
 0x141   : > { %v494_v54 = vstv %s645_s8 }
 0x142   : > { %495 = vst.msk [vmem:[%s266_s7] sm:$0x1] %vm472_vm0, %v494_v54 }
 0x143 PF: > { %s20_s17 = sadd.s32 1, %s832_s17   ;;  %s1010_s12 = smov %s816_s13 }
 0x144   : > { %p17_p0 = scmp.ge.s32.totalorder %s20_s17, 4   ;;  %s1011_s13 = smov %s820_s14 }
 0x145   : > { %s1012_s14 = smov %s903_s24  ;;  %s1013_s15 = smov %s828_s16 }
 0x146   : > { %s1014_s16 = smov %s1016_s19  ;;  %19 = sbr.rel (!%p17_p0) target bundleno = 6 (0x6), region = 93 }
 0x14b   :  { %531 = vsyncpa [#allocation3], 1 }
 0x14c   :  { %533 = vsyncpa [#allocation3 + $0x1], 1 }
 0x14d   :  { %534 = vsyncpa [#allocation5], 1 }
 0x14e   :  { %536 = vsyncpa [#allocation5 + $0x1], 1 }

</bundles_post_ra>
